<compile_context>
chip_gen: v7x
topology: tpu7x:2x2x1
jax: 0.10.0
libtpu: 0.0.40
codegen_flags: <defaults>
</compile_context>

<pallas_src>
import functools

import jax
import jax.numpy as jnp
from jax import lax
from jax.experimental import pallas as pl
from jax.experimental.pallas import tpu as pltpu


def _silu(z):
    # exp already runs on the EUP; the exact reciprocal keeps the f32 check
    # tight.  pl.reciprocal(..., approx=True) would move the divide onto the
    # EUP slot too (free while HBM-bound) at reduced precision.
    return z * pl.reciprocal(1.0 + jnp.exp(-z), approx=False)


def scalar_kernel(x_ref, w1_ref, b1_ref, w2_ref, b2_ref, o_ref):
    x = x_ref[...]                                                   # (TN, H)
    h = jnp.dot(x, w1_ref[...], preferred_element_type=jnp.float32)  # (TN, H2)
    h = _silu(h + b1_ref[...])
    # Lane-dense output: (1, H2) x (TN, H2) contracted over H2 -> (1, TN).
    # The implied transpose feed lands in the otherwise-idle XLU slot and the
    # store stays an unmasked (1, TN) vst.
    y = lax.dot_general(w2_ref[...], h, (((1,), (1,)), ((), ())),
                        preferred_element_type=jnp.float32)          # (1, TN)
    o_ref[0] = y + b2_ref[...]                                       # (1, TN) store


def _round_up(a, b):
    return (a + b - 1) // b * b


def _pick_tile_n(N, H, tile_n):
    """Pick the row-tile size (multiple of 128), sized by bytes."""
    if tile_n is None:
        # ~1 MiB of f32 x per block.
        tile_n = max(128, (1 << 20) // (4 * H))
        # For large inputs keep >= 2 grid steps so v7x's two TensorCores both
        # get work under dimension_semantics=("parallel",).
        if N * H * 4 >= (2 << 20):
            tile_n = min(tile_n, _round_up(pl.cdiv(N, 2), 128))
    # Multiple of 128: satisfies the (8, *) sublane rule on the x block and
    # keeps the (1, tn) output store lane-dense (unmasked).
    tn = _round_up(max(1, min(tile_n, N)), 128)
    # Cap double-buffered x (2 * tn * H * 4B) at ~16 MiB so large H still fits
    # v7x's 32 MiB scoped-VMEM default without raising vmem_limit_bytes.
    cap = max(128, ((8 << 20) // (4 * H)) // 128 * 128)
    return min(tn, cap)


@functools.partial(jax.jit, static_argnames=("tile_n",))
def scalar_forward(x, w1, b1, w2, b2, *, tile_n=None):
    """x: (N, H).  Torch-layout params: w1 (H2, H), b1 (H2,), w2 (1, H2), b2 (1,)."""
    N, H = x.shape
    H2 = w1.shape[0]

    tn = _pick_tile_n(N, H, tile_n)
    g = pl.cdiv(N, tn)            # ragged last block: Pallas masks it, garbage
                                  # rows only reach outputs we slice off.

    w1t = w1.T                    # (H, H2)   row-major x @ W on the MXU
    b1r = b1[None, :]             # (1, H2)
    w2r = w2.reshape(1, H2)       # (1, H2)   row form for the NT matmul
    b2r = b2.reshape(1, 1)        # (1, 1)

    cost = pl.CostEstimate(
        flops=2 * N * H * H2 + 2 * N * H2,
        transcendentals=N * H2,
        bytes_accessed=4 * N * H + 4 * g * tn + 4 * (H * H2 + 2 * H2 + 1),
    )

    out = pl.pallas_call(
        scalar_kernel,
        out_shape=jax.ShapeDtypeStruct((g, 1, tn), jnp.float32),
        grid_spec=pltpu.PrefetchScalarGridSpec(
            num_scalar_prefetch=0,
            grid=(g,),
            in_specs=[
                pl.BlockSpec((tn, H), lambda i: (i, 0)),   # x tile (pipelined)
                pl.BlockSpec((H, H2), lambda i: (0, 0)),   # w1  (VMEM-resident)
                pl.BlockSpec((1, H2), lambda i: (0, 0)),   # b1
                pl.BlockSpec((1, H2), lambda i: (0, 0)),   # w2
                pl.BlockSpec((1, 1), lambda i: (0, 0)),    # b2
            ],
            out_specs=pl.BlockSpec((1, 1, tn), lambda i: (i, 0, 0)),
        ),
        compiler_params=pltpu.CompilerParams(
            dimension_semantics=("parallel",)),
        cost_estimate=cost,
    )(x, w1t, b1r, w2r, b2r)

    return out.reshape(g * tn, 1)[:N]


if __name__ == "__main__":
    key = jax.random.PRNGKey(0)
    N, H = 1000, 32               # rows (atoms), hidden_channels
    H2 = H // 2
    kx, k1, k2 = jax.random.split(key, 3)

    x = jax.random.normal(kx, (N, H), jnp.float32)

    def xavier(k, out_f, in_f):   # mirrors nn.init.xavier_uniform_
        a = (6.0 / (in_f + out_f)) ** 0.5
        return jax.random.uniform(k, (out_f, in_f), jnp.float32, -a, a)

    w1 = xavier(k1, H2, H)                      # output_network[0].weight
    b1 = jnp.zeros((H2,), jnp.float32)          # output_network[0].bias
    w2 = xavier(k2, 1, H2)                      # output_network[2].weight
    b2 = jnp.zeros((1,), jnp.float32)           # output_network[2].bias

    # pure-JAX reference (mirrors the torch Sequential)
    href = jax.nn.silu(x @ w1.T + b1)
    ref = href @ w2.T + b2

    # multi-block grid with a ragged last block (no wrapper-side pad of x)
    out_tiled = jax.block_until_ready(
        scalar_forward(x, w1, b1, w2, b2, tile_n=256))
    # default byte-sized tiling (single padded block at this tiny demo size)
    out_auto = jax.block_until_ready(scalar_forward(x, w1, b1, w2, b2))

    for out in (out_tiled, out_auto):
        assert out.shape == (N, 1)
        assert jnp.allclose(out, ref, atol=1e-4, rtol=1e-4), float(
            jnp.max(jnp.abs(out - ref)))
    print("KERNEL_OK")
</pallas_src>

<mosaic_0001>
module attributes {stable_mosaic.version = 11 : i64} {
  func.func @scalar_kernel(%arg0: i32, %arg1: memref<256x32xf32, #tpu.memory_space<vmem>>, %arg2: memref<32x16xf32, #tpu.memory_space<vmem>>, %arg3: memref<1x16xf32, #tpu.memory_space<vmem>>, %arg4: memref<1x16xf32, #tpu.memory_space<vmem>>, %arg5: memref<1x1xf32, #tpu.memory_space<vmem>>, %arg6: memref<1x1x256xf32, #tpu.memory_space<vmem>>) attributes {dimension_semantics = [#tpu.dimension_semantics<parallel>], iteration_bounds = array<i64: 4>, scalar_prefetch = 0 : i64, scratch_operands = 0 : i64, tpu.core_type = #tpu.core_type<tc>, window_params = [{transform_indices = @transform_0, window_bounds = array<i64: 256, 32>}, {pipeline_mode = #tpu.pipeline_mode<synchronous>, transform_indices = @transform_1, window_bounds = array<i64: 32, 16>}, {pipeline_mode = #tpu.pipeline_mode<synchronous>, transform_indices = @transform_2, window_bounds = array<i64: 1, 16>}, {pipeline_mode = #tpu.pipeline_mode<synchronous>, transform_indices = @transform_3, window_bounds = array<i64: 1, 16>}, {pipeline_mode = #tpu.pipeline_mode<synchronous>, transform_indices = @transform_4, window_bounds = array<i64: 1, 1>}, {transform_indices = @transform_5, window_bounds = array<i64: 1, 1, 256>}]} {
    %c0 = arith.constant 0 : index
    %c0_0 = arith.constant 0 : index
    %0 = vector.load %arg1[%c0, %c0_0] : memref<256x32xf32, #tpu.memory_space<vmem>>, vector<256x32xf32>
    %c0_1 = arith.constant 0 : index
    %c0_2 = arith.constant 0 : index
    %1 = vector.load %arg2[%c0_1, %c0_2] : memref<32x16xf32, #tpu.memory_space<vmem>>, vector<32x16xf32>
    %cst = arith.constant dense<0.000000e+00> : vector<256x16xf32>
    %2 = tpu.matmul %0, %1, %cst {dimension_numbers = #tpu.dot_dimension_numbers<[1], [0], [0], [1], [0, 0, 1, 1], [], []>} : vector<256x32xf32>, vector<32x16xf32>, vector<256x16xf32> -> vector<256x16xf32>
    %c0_3 = arith.constant 0 : index
    %c0_4 = arith.constant 0 : index
    %3 = vector.load %arg3[%c0_3, %c0_4] : memref<1x16xf32, #tpu.memory_space<vmem>>, vector<1x16xf32>
    %4 = vector.broadcast %3 : vector<1x16xf32> to vector<256x16xf32>
    %5 = arith.addf %2, %4 : vector<256x16xf32>
    %cst_5 = arith.constant 0.000000e+00 : f32
    %6 = vector.broadcast %cst_5 : f32 to vector<256x16xf32>
    %7 = arith.subf %6, %5 : vector<256x16xf32>
    %8 = math.exp %7 : vector<256x16xf32>
    %cst_6 = arith.constant 1.000000e+00 : f32
    %9 = vector.broadcast %cst_6 : f32 to vector<256x16xf32>
    %10 = arith.addf %9, %8 : vector<256x16xf32>
    %11 = tpu.reciprocal %10 : vector<256x16xf32> -> vector<256x16xf32>
    %12 = arith.mulf %5, %11 : vector<256x16xf32>
    %c0_7 = arith.constant 0 : index
    %c0_8 = arith.constant 0 : index
    %13 = vector.load %arg4[%c0_7, %c0_8] : memref<1x16xf32, #tpu.memory_space<vmem>>, vector<1x16xf32>
    %cst_9 = arith.constant dense<0.000000e+00> : vector<1x256xf32>
    %14 = tpu.matmul %13, %12, %cst_9 {dimension_numbers = #tpu.dot_dimension_numbers<[1], [1], [0], [0], [0, 0, 1, 0], [], []>} : vector<1x16xf32>, vector<256x16xf32>, vector<1x256xf32> -> vector<1x256xf32>
    %c0_10 = arith.constant 0 : index
    %c0_11 = arith.constant 0 : index
    %15 = vector.load %arg5[%c0_10, %c0_11] : memref<1x1xf32, #tpu.memory_space<vmem>>, vector<1x1xf32>
    %16 = vector.broadcast %15 : vector<1x1xf32> to vector<1x256xf32>
    %17 = arith.addf %14, %16 : vector<1x256xf32>
    %c0_12 = arith.constant 0 : index
    %c0_13 = arith.constant 0 : index
    %c0_14 = arith.constant 0 : index
    %18 = vector.load %arg6[%c0_12, %c0_13, %c0_14] : memref<1x1x256xf32, #tpu.memory_space<vmem>>, vector<1x1x256xf32>
    %19 = vector.shape_cast %18 : vector<1x1x256xf32> to vector<1x256xf32>
    %20 = vector.shape_cast %17 : vector<1x256xf32> to vector<1x1x256xf32>
    tpu.vector_store %arg6[%c0_12, %c0_13, %c0_14], %20 {strides = array<i32>} : memref<1x1x256xf32, #tpu.memory_space<vmem>>, vector<1x1x256xf32>,
    return
  }
  func.func @transform_0(%arg0: i32) -> (i32, i32) {
    %c0_i32 = arith.constant 0 : i32
    %c0_i32_0 = arith.constant 0 : i32
    return %arg0, %c0_i32 : i32, i32
  }
  func.func @transform_1(%arg0: i32) -> (i32, i32) {
    %c0_i32 = arith.constant 0 : i32
    %c0_i32_0 = arith.constant 0 : i32
    %c0_i32_1 = arith.constant 0 : i32
    return %c0_i32, %c0_i32_0 : i32, i32
  }
  func.func @transform_2(%arg0: i32) -> (i32, i32) {
    %c0_i32 = arith.constant 0 : i32
    %c0_i32_0 = arith.constant 0 : i32
    %c0_i32_1 = arith.constant 0 : i32
    return %c0_i32, %c0_i32_0 : i32, i32
  }
  func.func @transform_3(%arg0: i32) -> (i32, i32) {
    %c0_i32 = arith.constant 0 : i32
    %c0_i32_0 = arith.constant 0 : i32
    %c0_i32_1 = arith.constant 0 : i32
    return %c0_i32, %c0_i32_0 : i32, i32
  }
  func.func @transform_4(%arg0: i32) -> (i32, i32) {
    %c0_i32 = arith.constant 0 : i32
    %c0_i32_0 = arith.constant 0 : i32
    %c0_i32_1 = arith.constant 0 : i32
    return %c0_i32, %c0_i32_0 : i32, i32
  }
  func.func @transform_5(%arg0: i32) -> (i32, i32, i32) {
    %c0_i32 = arith.constant 0 : i32
    %c0_i32_0 = arith.constant 0 : i32
    %c0_i32_1 = arith.constant 0 : i32
    return %arg0, %c0_i32, %c0_i32_0 : i32, i32, i32
  }
}

</mosaic_0001>

<bundles_post_ra>
// kernel: scalar_forward.1
= control target key start
LH: loop header
LB: loop body
LE: loop exit
PB: predicated region body
PF: predicated region fallthrough
CT: control target
= control target key end

     0   :  { %s2075_s0 = inlined_call_operand.vmem [shape: f32[1000,32], index: 0, kind: input, shape index: {}]   ;;  %s2076_s1 = inlined_call_operand.vmem [shape: f32[32,16], index: 1, kind: input, shape index: {}]   ;;  %s2077_s2 = inlined_call_operand.vmem [shape: f32[1,16], index: 2, kind: input, shape index: {}]   ;;  %s2078_s3 = inlined_call_operand.vmem [shape: f32[1,16], index: 3, kind: input, shape index: {}]   ;;  %s2079_s4 = inlined_call_operand.<no memory space> [shape: f32[1,1], index: 4, kind: input, shape index: {}]   ;;  %s2080_s5 = inlined_call_operand.hbm [shape: f32[4,1,256], index: 5, kind: output, shape index: {}]  }
   0x1   :  { %v10_v0 = vstv %s2079_s4 }
   0x2   :  { %11 = vst [vmem:[#allocation2] sm:$0x1] %v10_v0 }
   0x3   :  { %12 = vsyncpa [#allocation4], 0 }
   0x4   :  { %14 = vsyncpa [#allocation4 + $0x1], 0  ;;  %s1614_s20 = smov 0   ;;  %s1616_s21 = smov 0  }
   0x5   :  { %s1618_s22 = smov 0   ;;  %s1620_s23 = smov 0  }
   0x6 LB: > { %s1082_s4 = sadd.s32 4294967295, %s1576_s23   ;;  %s1083_s24 = sadd.s32 4294967294, %s1576_s23   ;;  %s1576_s23 = sphi %s1620_s23, %s2088_s23   ;;  %s1572_s22 = sphi %s1618_s22, %s2087_s22   ;;  %s1568_s21 = sphi %s1616_s21, %s2086_s21   ;;  %s1564_s20 = sphi %s1614_s20, %s2085_s20  }
   0x7   : > { %s1637_s25 = sadd.s32 1, %s1576_s23   ;;  %s137_s26 = sadd.s32 1, %s1572_s22 }
   0x8   : > { %s134_s27 = ssub.s32 %s1576_s23, %s1637_s25  ;;  %p147_p0 = scmp.ne.s32.totalorder %s1572_s22, %s1568_s21 }
   0x9   : > { %p135_p1 = scmp.eq.s32.totalorder %s134_s27, 0  ;;  %p148_p2 = scmp.eq.s32.totalorder %s1082_s4, 3 }
   0xa   : > { %p153_p3 = scmp.ne.s32.totalorder %s1568_s21, %s1564_s20  ;;  %p154_p4 = scmp.eq.s32.totalorder %s1083_s24, 3 }
   0xb   : > { %s1647_s28 = scalar_select %p135_p1, %s1572_s22, %s137_s26  }
   0xc   : > { %p1649_p5 = por %p148_p2, %p147_p0  ;;  %p1653_p6 = por %p154_p4, %p153_p3 }
   0xd   : > { %p1086_p7 = scmp.ge.s32.totalorder %s1576_s23, 1  ;;  %p201_p8 = scmp.lt.s32.totalorder %s1576_s23, 5 }
   0xf   : > { %p202_p9 = pnand %p1086_p7, %p201_p8 }
  0x10   : > { %v279_v1 = vld [vmem:[%s2076_s1] sm:$0xff] (!%p202_p9)  ;;  %v280_v2 = vld [vmem:[%s2076_s1 + $0x8] sm:$0xff] (!%p202_p9)  ;;  %v281_v3 = vld [vmem:[%s2076_s1 + $0x10] sm:$0xff] (!%p202_p9)  ;;  %s1668_s12 = sshll.u32 (!%p202_p9), %s1082_s4, 5  ;;  %vm290_vm0 = vcmask (!%p202_p9), 261120   ;;  %vm815_vm1 = vcmask (!%p202_p9), 130048  }
  0x11   : > { %205 = sbr.rel (%p202_p9) target bundleno = 610 (0x262), region = 40  ;;  %v1288_v4 = vpack.c.bf16 (!%p202_p9), %v280_v2, %v279_v1  ;;  %v282_v5 = vld [vmem:[%s2076_s1 + $0x18] sm:$0xff] (!%p202_p9)  ;;  %p238_p10 = scmp.lt.s32.totalorder (!%p202_p9), %s1668_s12, 124  ;;  %v1747_v39 = vld [vmem:[%s2077_s2] ss:$0 sm:$0xff] (!%p202_p9)  ;;  %v1578_v55 = vmov (!%p202_p9), 0   ;;  %vm1952_vm2 = vmpackc.low (!%p202_p9), %vm815_vm1, %vm815_vm1 }
  0x12   : > { %v1292_v6 = vpack.c.bf16 (!%p202_p9), %v282_v5, %v281_v3  ;;  %v1752_v40 = vld [vmem:[%s2078_s3] sm:$0x1] (!%p202_p9)  ;;  %1385 = vset.pattern.permute.xlu0 (!%p202_p9), %v1578_v55  ;;  %s230_s6 = sand.u32 (!%p202_p9), 1, %s1568_s21   ;;  %s2033_s13 = scalar_lea.hbm (!%p202_p9), %s2080_s5, %s1668_s12 }
  0x13   : > { %1289 = vmatprep.subr.bf16.mxu0 (!%p202_p9), %v1288_v4  ;;  %1230 = vmatprep.mubr.msk.f32.mxu1 (!%p202_p9), %vm815_vm1, %v1752_v40  ;;  %v805_v53 = vld [vmem:[#allocation2] sm:$0x1] (!%p202_p9)  ;;  %s1087_s7 = sshll.u32 (!%p202_p9), %s230_s6, 1  ;;  %s1010_s14 = scalar_lea.sflag (!%p202_p9), [#allocation4], %s230_s6 }
  0x14   : > { %1291 = vmatpush3.bf16.msra.mxu0 (!%p202_p9), %v1288_v4  ;;  %808 = vperm.xlu0 (!%p202_p9), %1385, %v805_v53   ;;  %s232_s8 = scalar_lea.vmem (!%p202_p9), [#allocation3], %s1087_s7 }
  0x15   : > { %1293 = vmatprep.subr.bf16.mxu0 (!%p202_p9), %v1292_v6  ;;  %s1024_s9 = sshll.u32 (!%p202_p9), %s232_s8, 4  ;;  %s2035_s9 = int_to_ptr.vmem [resolvable:$true] %s1024_s9 }
  0x18   : > { %s239_s15 = scalar_select %p238_p10, %s1668_s12, 124  ;;  %1295 = vmatpush3.bf16.msra.mxu0 %v1292_v6 }
  0x1a   : > { %s1089_s16 = sshll.u32 %s239_s15, 3  ;;  %s1514_s15 = scalar_lea.vmem %s2035_s9, 32 }
  0x1b   : > { %s1678_s19 = scalar_lea.vmem %s2075_s0, %s1089_s16  ;;  %p1515_p11 = scmp.ne.s32.totalorder %s2035_s9, %s1514_s15 }
  0x1c   : > { %v247_v7 = vld [vmem:[%s1678_s19] sm:$0xff]  ;;  %v248_v8 = vld [vmem:[%s1678_s19 + $0x8] sm:$0xff]  ;;  %v249_v9 = vld [vmem:[%s1678_s19 + $0x10] sm:$0xff]  ;;  %s1580_s16 = smov [#allocation3]  }
  0x1d   : > { %1240 = vmatprep.mubr.msk.f32.mxu0 %vm290_vm0, %v247_v7  ;;  %v250_v10 = vld [vmem:[%s1678_s19 + $0x18] sm:$0xff]  ;;  %v251_v11 = vld [vmem:[%s1678_s19 + $0x20] sm:$0xff]  ;;  %v252_v12 = vld [vmem:[%s1678_s19 + $0x28] sm:$0xff]  ;;  %p1516_p12 = pnand %p1515_p11, %p1649_p5  ;;  %s1518_s17 = sshll.u32 %s1580_s16, 4  ;;  %s1519_s17 = int_to_ptr.vmem [resolvable:$false] %s1518_s17 }
  0x1e   : > { %1241 = vmatmul.mubr.msk.f32.vlgmr.msra.gmra.mrb[0].mxu0 %vm290_vm0, %v248_v8  ;;  %v253_v13 = vld [vmem:[%s1678_s19 + $0x30] sm:$0xff]  ;;  %v254_v14 = vld [vmem:[%s1678_s19 + $0x38] sm:$0xff]  ;;  %v255_v15 = vld [vmem:[%s1678_s19 + $0x40] sm:$0xff]  ;;  %s1520_s18 = scalar_lea.vmem %s1519_s17, 64  ;;  %p1521_p0 = scmp.lt.s32.totalorder %s2035_s9, %s1519_s17 }
  0x1f   : > { %1243 = vmatprep.mubr.msk.f32.mxu0 %vm290_vm0, %v249_v9  ;;  %v256_v16 = vld [vmem:[%s1678_s19 + $0x48] sm:$0xff]  ;;  %v257_v17 = vld [vmem:[%s1678_s19 + $0x50] sm:$0xff]  ;;  %v258_v18 = vld [vmem:[%s1678_s19 + $0x58] sm:$0xff]  ;;  %p1517_p13 = pneg %p1516_p12  ;;  %p1522_p1 = scmp.lt.s32.totalorder %s1520_s18, %s1514_s15 }
  0x20   : > { %v259_v19 = vld [vmem:[%s1678_s19 + $0x60] sm:$0xff]  ;;  %v260_v20 = vld [vmem:[%s1678_s19 + $0x68] sm:$0xff]  ;;  %v261_v21 = vld [vmem:[%s1678_s19 + $0x70] sm:$0xff] }
  0x21   : > { %v262_v22 = vld [vmem:[%s1678_s19 + $0x78] sm:$0xff]  ;;  %v263_v23 = vld [vmem:[%s1678_s19 + $0x80] sm:$0xff]  ;;  %v264_v24 = vld [vmem:[%s1678_s19 + $0x88] sm:$0xff]  ;;  %p1523_p2 = por %p1522_p1, %p1521_p0 }
  0x22   : > { %1244 = vmatmul.mubr.msk.f32.gmra.mrb[2].mxu0 %vm290_vm0, %v250_v10  ;;  %v265_v25 = vld [vmem:[%s1678_s19 + $0x90] sm:$0xff]  ;;  %v266_v26 = vld [vmem:[%s1678_s19 + $0x98] sm:$0xff]  ;;  %v267_v27 = vld [vmem:[%s1678_s19 + $0xa0] sm:$0xff] }
  0x23   : > { %1246 = vmatprep.mubr.msk.f32.mxu0 %vm290_vm0, %v251_v11  ;;  %v268_v28 = vld [vmem:[%s1678_s19 + $0xa8] sm:$0xff]  ;;  %v269_v29 = vld [vmem:[%s1678_s19 + $0xb0] sm:$0xff]  ;;  %v270_v30 = vld [vmem:[%s1678_s19 + $0xb8] sm:$0xff]  ;;  %p1524_p3 = pnand %p1523_p2, %p1517_p13 }
  0x24   : > { %v271_v31 = vld [vmem:[%s1678_s19 + $0xc0] sm:$0xff]  ;;  %v272_v32 = vld [vmem:[%s1678_s19 + $0xc8] sm:$0xff]  ;;  %v273_v33 = vld [vmem:[%s1678_s19 + $0xd0] sm:$0xff] }
  0x25   : > { %v274_v34 = vld [vmem:[%s1678_s19 + $0xd8] sm:$0xff]  ;;  %v275_v35 = vld [vmem:[%s1678_s19 + $0xe0] sm:$0xff]  ;;  %v276_v36 = vld [vmem:[%s1678_s19 + $0xe8] sm:$0xff] }
  0x26   : > { %1247 = vmatmul.mubr.msk.f32.gmra.mrb[4].mxu0 %vm290_vm0, %v252_v12  ;;  %v277_v37 = vld [vmem:[%s1678_s19 + $0xf0] sm:$0xff]  ;;  %v278_v38 = vld [vmem:[%s1678_s19 + $0xf8] sm:$0xff] }
  0x27   : > { %1249 = vmatprep.mubr.msk.f32.mxu0 %vm290_vm0, %v253_v13 }
  0x2a   : > { %1250 = vmatmul.mubr.msk.f32.gmra.mrb[6].mxu0 %vm290_vm0, %v254_v14 }
  0x2b   : > { %1252 = vmatprep.mubr.msk.f32.mxu0 %vm290_vm0, %v255_v15 }
  0x2e   : > { %1253 = vmatmul.mubr.msk.f32.gmra.mrb[8].mxu0 %vm290_vm0, %v256_v16 }
  0x2f   : > { %1255 = vmatprep.mubr.msk.f32.mxu0 %vm290_vm0, %v257_v17 }
  0x32   : > { %1256 = vmatmul.mubr.msk.f32.gmra.mrb[10].mxu0 %vm290_vm0, %v258_v18 }
  0x33   : > { %1258 = vmatprep.mubr.msk.f32.mxu0 %vm290_vm0, %v259_v19 }
  0x36   : > { %1259 = vmatmul.mubr.msk.f32.gmra.mrb[12].mxu0 %vm290_vm0, %v260_v20 }
  0x37   : > { %1261 = vmatprep.mubr.msk.f32.mxu0 %vm290_vm0, %v261_v21 }
  0x3a   : > { %1262 = vmatmul.mubr.msk.f32.gmra.mrb[14].mxu0 %vm290_vm0, %v262_v22 }
  0x3b   : > { %1264 = vmatprep.mubr.msk.f32.mxu0 %vm290_vm0, %v263_v23 }
  0x3e   : > { %1265 = vmatmul.mubr.msk.f32.gmra.mrb[16].mxu0 %vm290_vm0, %v264_v24 }
  0x3f   : > { %1267 = vmatprep.mubr.msk.f32.mxu0 %vm290_vm0, %v265_v25 }
  0x42   : > { %1268 = vmatmul.mubr.msk.f32.gmra.mrb[18].mxu0 %vm290_vm0, %v266_v26 }
  0x43   : > { %1270 = vmatprep.mubr.msk.f32.mxu0 %vm290_vm0, %v267_v27 }
  0x46   : > { %1271 = vmatmul.mubr.msk.f32.gmra.mrb[20].mxu0 %vm290_vm0, %v268_v28 }
  0x47   : > { %1273 = vmatprep.mubr.msk.f32.mxu0 %vm290_vm0, %v269_v29 }
  0x4a   : > { %1274 = vmatmul.mubr.msk.f32.gmra.mrb[22].mxu0 %vm290_vm0, %v270_v30 }
  0x4b   : > { %1276 = vmatprep.mubr.msk.f32.mxu0 %vm290_vm0, %v271_v31 }
  0x4e   : > { %1277 = vmatmul.mubr.msk.f32.gmra.mrb[24].mxu0 %vm290_vm0, %v272_v32 }
  0x4f   : > { %1279 = vmatprep.mubr.msk.f32.mxu0 %vm290_vm0, %v273_v33 }
  0x52   : > { %1280 = vmatmul.mubr.msk.f32.gmra.mrb[26].mxu0 %vm290_vm0, %v274_v34 }
  0x53   : > { %1282 = vmatprep.mubr.msk.f32.mxu0 %vm290_vm0, %v275_v35 }
  0x56   : > { %1283 = vmatmul.mubr.msk.f32.gmra.mrb[28].mxu0 %vm290_vm0, %v276_v36 }
  0x57   : > { %1285 = vmatprep.mubr.msk.f32.mxu0 %vm290_vm0, %v277_v37 }
  0x5a   : > { %1286 = vmatmul.mubr.msk.f32.gmra.mrb[30].mxu0 %vm290_vm0, %v278_v38 }
  0xf1   : > { %v1242_v41 = vpop.f32.mrb[0].mxu0 }
  0xf2   : > { %v1757_v42 = vadd.f32 %v1242_v41, %v1747_v39  ;;  %v453_v43 = vpop.f32.mrb[1].mxu0 }
  0xf3   : > { %v1760_v44 = vadd.f32 %v1747_v39, %v453_v43 }
  0xf4   : > { %v613_v45 = vsub.f32 0.0, %v1757_v42 }
  0xf5   : > { %v612_v46 = vsub.f32 0.0, %v1760_v44  ;;  %v1245_v47 = vpop.f32.mrb[2].mxu0 }
  0xf6   : > { %v646_v48 = vmul.f32 1.442695, %v613_v45  ;;  %v1765_v49 = vadd.f32 %v1245_v47, %v1747_v39  ;;  %v463_v50 = vpop.f32.mrb[3].mxu0 }
  0xf7   : > { %v644_v51 = vmul.f32 1.442695, %v612_v46  ;;  %v1768_v52 = vadd.f32 %v1747_v39, %v463_v50 }
  0xf8   : > { %1386 = vpow2.f32 %v646_v48  ;;  %v615_v54 = vsub.f32 0.0, %v1765_v49 }
  0xf9   : > { %1388 = vpow2.f32 %v644_v51  ;;  %v614_v56 = vsub.f32 0.0, %v1768_v52  ;;  %v1248_v57 = vpop.f32.mrb[4].mxu0 }
  0xfa   : > { %v650_v58 = vmul.f32 1.442695, %v615_v54  ;;  %v1773_v59 = vadd.f32 %v1248_v57, %v1747_v39  ;;  %v473_v60 = vpop.f32.mrb[5].mxu0 }
  0xfb   : > { %v648_v61 = vmul.f32 1.442695, %v614_v56  ;;  %v1776_v62 = vadd.f32 %v1747_v39, %v473_v60 }
  0xfc   : > { %1390 = vpow2.f32 %v650_v58  ;;  %v617_v63 = vsub.f32 0.0, %v1773_v59 }
  0xfd   : > { %1392 = vpow2.f32 %v648_v61  ;;  %v616_v0 = vsub.f32 0.0, %v1776_v62  ;;  %v1251_v1 = vpop.f32.mrb[6].mxu0 }
  0xfe   : > { %v654_v2 = vmul.f32 1.442695, %v617_v63  ;;  %v1781_v3 = vadd.f32 %v1251_v1, %v1747_v39  ;;  %v483_v4 = vpop.f32.mrb[7].mxu0 }
  0xff   : > { %v652_v5 = vmul.f32 1.442695, %v616_v0  ;;  %v1784_v6 = vadd.f32 %v1747_v39, %v483_v4 }
 0x100   : > { %1394 = vpow2.f32 %v654_v2  ;;  %v619_v7 = vsub.f32 0.0, %v1781_v3 }
 0x101   : > { %1396 = vpow2.f32 %v652_v5  ;;  %v618_v8 = vsub.f32 0.0, %v1784_v6  ;;  %v1254_v9 = vpop.f32.mrb[8].mxu0 }
 0x102   : > { %v1387_v10 = vpop.eup %1386  ;;  %v658_v11 = vmul.f32 1.442695, %v619_v7  ;;  %v1789_v12 = vadd.f32 %v1254_v9, %v1747_v39  ;;  %v493_v13 = vpop.f32.mrb[9].mxu0 }
 0x103   : > { %v1389_v14 = vpop.eup %1388  ;;  %v709_v15 = vadd.f32 1.0, %v1387_v10  ;;  %v656_v16 = vmul.f32 1.442695, %v618_v8  ;;  %v1792_v17 = vadd.f32 %v1747_v39, %v493_v13 }
 0x104   : > { %v708_v18 = vadd.f32 1.0, %v1389_v14  ;;  %1398 = vpow2.f32 %v658_v11  ;;  %v621_v19 = vsub.f32 0.0, %v1789_v12 }
 0x105   : > { %1400 = vrcp.f32 %v709_v15  ;;  %v620_v20 = vsub.f32 0.0, %v1792_v17  ;;  %v1257_v21 = vpop.f32.mrb[10].mxu0 }
 0x106   : > { %v1391_v22 = vpop.eup %1390  ;;  %1402 = vrcp.f32 %v708_v18  ;;  %v662_v23 = vmul.f32 1.442695, %v621_v19  ;;  %v1797_v24 = vadd.f32 %v1257_v21, %v1747_v39  ;;  %v503_v25 = vpop.f32.mrb[11].mxu0 }
 0x107   : > { %v1393_v26 = vpop.eup %1392  ;;  %v711_v27 = vadd.f32 1.0, %v1391_v22  ;;  %1404 = vpow2.f32 %v656_v16  ;;  %v660_v28 = vmul.f32 1.442695, %v620_v20  ;;  %v1800_v29 = vadd.f32 %v1747_v39, %v503_v25 }
 0x108   : > { %v710_v30 = vadd.f32 1.0, %v1393_v26  ;;  %1406 = vpow2.f32 %v662_v23  ;;  %v623_v31 = vsub.f32 0.0, %v1797_v24 }
 0x109   : > { %1408 = vrcp.f32 %v711_v27  ;;  %v622_v32 = vsub.f32 0.0, %v1800_v29  ;;  %v1260_v33 = vpop.f32.mrb[12].mxu0 }
 0x10a   : > { %v1395_v34 = vpop.eup %1394  ;;  %1410 = vrcp.f32 %v710_v30  ;;  %v666_v35 = vmul.f32 1.442695, %v623_v31  ;;  %v1805_v36 = vadd.f32 %v1260_v33, %v1747_v39  ;;  %v513_v37 = vpop.f32.mrb[13].mxu0 }
 0x10b   : > { %v1397_v38 = vpop.eup %1396  ;;  %v713_v41 = vadd.f32 1.0, %v1395_v34  ;;  %1412 = vpow2.f32 %v660_v28  ;;  %v664_v43 = vmul.f32 1.442695, %v622_v32  ;;  %v1808_v45 = vadd.f32 %v1747_v39, %v513_v37 }
 0x10c   : > { %v712_v46 = vadd.f32 1.0, %v1397_v38  ;;  %1414 = vpow2.f32 %v666_v35  ;;  %v625_v47 = vsub.f32 0.0, %v1805_v36 }
 0x10d   : > { %1416 = vrcp.f32 %v713_v41  ;;  %v624_v48 = vsub.f32 0.0, %v1808_v45  ;;  %v1263_v50 = vpop.f32.mrb[14].mxu0 }
 0x10e   : > { %v1399_v51 = vpop.eup %1398  ;;  %1418 = vrcp.f32 %v712_v46  ;;  %v670_v53 = vmul.f32 1.442695, %v625_v47  ;;  %v1813_v54 = vadd.f32 %v1263_v50, %v1747_v39  ;;  %v523_v55 = vpop.f32.mrb[15].mxu0 }
 0x10f   : > { %v1401_v56 = vpop.eup %1400  ;;  %v715_v57 = vadd.f32 1.0, %v1399_v51  ;;  %1420 = vpow2.f32 %v664_v43  ;;  %v668_v58 = vmul.f32 1.442695, %v624_v48  ;;  %v1816_v60 = vadd.f32 %v1747_v39, %v523_v55 }
 0x110   : > { %v1403_v61 = vpop.eup %1402  ;;  %v1819_v63 = vmul.f32 %v1401_v56, %v1757_v42  ;;  %1422 = vpow2.f32 %v670_v53  ;;  %v627_v0 = vsub.f32 0.0, %v1813_v54 }
 0x111   : > { %v1405_v1 = vpop.eup %1404  ;;  %v1823_v2 = vmul.f32 %v1403_v61, %v1760_v44  ;;  %1424 = vrcp.f32 %v715_v57  ;;  %v626_v4 = vsub.f32 0.0, %v1816_v60  ;;  %v1266_v5 = vpop.f32.mrb[16].mxu0 }
 0x112   : > { %v1407_v7 = vpop.eup %1406  ;;  %v714_v8 = vadd.f32 1.0, %v1405_v1  ;;  %1426 = vpow2.f32 %v668_v58  ;;  %v674_v9 = vmul.f32 1.442695, %v627_v0  ;;  %v1827_v10 = vadd.f32 %v1266_v5, %v1747_v39  ;;  %v533_v42 = vpop.f32.mrb[17].mxu0 }
 0x113   : > { %v1409_v11 = vpop.eup %1408  ;;  %v717_v13 = vadd.f32 1.0, %v1407_v7  ;;  %v672_v14 = vmul.f32 1.442695, %v626_v4  ;;  %v1830_v15 = vadd.f32 %v1747_v39, %v533_v42  ;;  %v1299_v44 = vpack.c.bf16 %v1819_v63, %v1823_v2 }
 0x114   : > { %v1411_v16 = vpop.eup %1410  ;;  %v1835_v18 = vmul.f32 %v1409_v11, %v1765_v49  ;;  %1428 = vrcp.f32 %v714_v8  ;;  %v629_v19 = vsub.f32 0.0, %v1827_v10 }
 0x115   : > { %v1413_v20 = vpop.eup %1412  ;;  %v1839_v21 = vmul.f32 %v1411_v16, %v1768_v52  ;;  %1430 = vrcp.f32 %v717_v13  ;;  %v628_v22 = vsub.f32 0.0, %v1830_v15  ;;  %v1269_v23 = vpop.f32.mrb[18].mxu0 }
 0x116   : > { %v1415_v25 = vpop.eup %1414  ;;  %v716_v26 = vadd.f32 1.0, %v1413_v20  ;;  %1432 = vpow2.f32 %v674_v9  ;;  %v678_v27 = vmul.f32 1.442695, %v629_v19  ;;  %v1843_v28 = vadd.f32 %v1269_v23, %v1747_v39  ;;  %v543_v49 = vpop.f32.mrb[19].mxu0 }
 0x117   : > { %v1417_v30 = vpop.eup %1416  ;;  %v1305_v31 = vpack.c.bf16 %v1835_v18, %v1839_v21  ;;  %v719_v32 = vadd.f32 1.0, %v1415_v25  ;;  %1434 = vpow2.f32 %v672_v14  ;;  %v676_v52 = vmul.f32 1.442695, %v628_v22 }
 0x118   : > { %v1419_v33 = vpop.eup %1418  ;;  %v1848_v34 = vmul.f32 %v1417_v30, %v1773_v59  ;;  %1436 = vrcp.f32 %v716_v26  ;;  %v631_v35 = vsub.f32 0.0, %v1843_v28  ;;  %v1852_v37 = vadd.f32 %v1747_v39, %v543_v49 }
 0x119   : > { %v1421_v38 = vpop.eup %1420  ;;  %v1855_v41 = vmul.f32 %v1419_v33, %v1776_v62  ;;  %1438 = vrcp.f32 %v719_v32  ;;  %v1272_v43 = vpop.f32.mrb[20].mxu0 }
 0x11a   : > { %v1423_v46 = vpop.eup %1422  ;;  %v718_v47 = vadd.f32 1.0, %v1421_v38  ;;  %1440 = vpow2.f32 %v678_v27  ;;  %v682_v48 = vmul.f32 1.442695, %v631_v35  ;;  %v630_v50 = vsub.f32 0.0, %v1852_v37  ;;  %v553_v59 = vpop.f32.mrb[21].mxu0 }
 0x11b   : > { %v1425_v51 = vpop.eup %1424  ;;  %v1311_v53 = vpack.c.bf16 %v1848_v34, %v1855_v41  ;;  %v721_v55 = vadd.f32 1.0, %v1423_v46  ;;  %1442 = vpow2.f32 %v676_v52  ;;  %v1861_v56 = vadd.f32 %v1272_v43, %v1747_v39 }
 0x11c   : > { %v1427_v62 = vpop.eup %1426  ;;  %1444 = vrcp.f32 %v718_v47  ;;  %v680_v57 = vmul.f32 1.442695, %v630_v50  ;;  %v1864_v58 = vadd.f32 %v1747_v39, %v553_v59  ;;  %v1867_v61 = vmul.f32 %v1425_v51, %v1781_v3 }
 0x11d   : > { %1446 = vrcp.f32 %v721_v55  ;;  %v720_v0 = vadd.f32 1.0, %v1427_v62  ;;  %v633_v1 = vsub.f32 0.0, %v1861_v56  ;;  %v1275_v4 = vpop.f32.mrb[22].mxu0  ;;  %v811_v41 = vlaneseq }
 0x11e   : > { %v1429_v5 = vpop.eup %1428  ;;  %1448 = vpow2.f32 %v682_v48  ;;  %v632_v7 = vsub.f32 0.0, %v1864_v58  ;;  %v1872_v8 = vadd.f32 %v1275_v4, %v1747_v39  ;;  %v563_v9 = vpop.f32.mrb[23].mxu0 }
 0x11f   : > { %v1431_v42 = vpop.eup %1430  ;;  %v1875_v11 = vmul.f32 %v1429_v5, %v1784_v6  ;;  %1450 = vrcp.f32 %v720_v0  ;;  %v686_v3 = vmul.f32 1.442695, %v633_v1  ;;  %v1878_v13 = vadd.f32 %v1747_v39, %v563_v9 }
 0x120   : > { %v1433_v14 = vpop.eup %1432  ;;  %v1881_v16 = vmul.f32 %v1431_v42, %v1789_v12  ;;  %1452 = vpow2.f32 %v680_v57  ;;  %v684_v19 = vmul.f32 1.442695, %v632_v7  ;;  %v635_v20 = vsub.f32 0.0, %v1872_v8 }
 0x121   : > { %v1435_v22 = vpop.eup %1434  ;;  %v1317_v23 = vpack.c.bf16 %v1867_v61, %v1875_v11  ;;  %v723_v25 = vadd.f32 1.0, %v1433_v14  ;;  %1454 = vpow2.f32 %v686_v3  ;;  %v634_v6 = vsub.f32 0.0, %v1878_v13  ;;  %v1278_v26 = vpop.f32.mrb[24].mxu0 }
 0x122   : > { %v1437_v27 = vpop.eup %1436  ;;  %v722_v49 = vadd.f32 1.0, %v1435_v22  ;;  %1456 = vpow2.f32 %v684_v19  ;;  %v690_v30 = vmul.f32 1.442695, %v635_v20  ;;  %v1888_v12 = vadd.f32 %v1278_v26, %v1747_v39  ;;  %v573_v32 = vpop.f32.mrb[25].mxu0 }
 0x123   : > { %v1439_v52 = vpop.eup %1438  ;;  %v1891_v33 = vmul.f32 %v1437_v27, %v1792_v17  ;;  %1458 = vrcp.f32 %v723_v25  ;;  %v688_v35 = vmul.f32 1.442695, %v634_v6  ;;  %v1894_v38 = vadd.f32 %v1747_v39, %v573_v32  ;;  %v809_v11 = vpop.permute.xlu0 %808 }
 0x124   : > { %v1441_v43 = vpop.eup %1440  ;;  %v1897_v46 = vmul.f32 %v1439_v52, %v1797_v24  ;;  %1460 = vrcp.f32 %v722_v49  ;;  %v637_v47 = vsub.f32 0.0, %v1888_v12  ;;  %vm1006_vm3 = vcmp.lt.s32.totalorder %v811_v41, 256 }
 0x125   : > { %v1443_v48 = vpop.eup %1442  ;;  %v1323_v50 = vpack.c.bf16 %v1881_v16, %v1891_v33  ;;  %v725_v59 = vadd.f32 1.0, %v1441_v43  ;;  %1462 = vpow2.f32 %v690_v30  ;;  %v636_v17 = vsub.f32 0.0, %v1894_v38  ;;  %v1281_v51 = vpop.f32.mrb[26].mxu0 }
 0x126   : > { %v1445_v55 = vpop.eup %1444  ;;  %v724_v62 = vadd.f32 1.0, %v1443_v48  ;;  %1464 = vpow2.f32 %v688_v35  ;;  %v694_v57 = vmul.f32 1.442695, %v637_v47  ;;  %v1904_v0 = vadd.f32 %v1281_v51, %v1747_v39  ;;  %v583_v24 = vpop.f32.mrb[27].mxu0 }
 0x127   : > { %v1447_v1 = vpop.eup %1446  ;;  %v1907_v4 = vmul.f32 %v1445_v55, %v1800_v29  ;;  %1466 = vrcp.f32 %v725_v59  ;;  %v692_v5 = vmul.f32 1.442695, %v636_v17  ;;  %v1910_v7 = vadd.f32 %v1747_v39, %v583_v24 }
 0x128   : > { %v1449_v9 = vpop.eup %1448  ;;  %v1913_v42 = vmul.f32 %v1447_v1, %v1805_v36  ;;  %1468 = vrcp.f32 %v724_v62  ;;  %v639_v3 = vsub.f32 0.0, %v1904_v0  ;;  %v1579_v16 = vmov 1966171168  }
 0x129   : > { %v1451_v14 = vpop.eup %1450  ;;  %v1329_v19 = vpack.c.bf16 %v1897_v46, %v1907_v4  ;;  %v727_v20 = vadd.f32 1.0, %v1449_v9  ;;  %1470 = vpow2.f32 %v694_v57  ;;  %v638_v29 = vsub.f32 0.0, %v1910_v7  ;;  %v1284_v22 = vpop.f32.mrb[28].mxu0 }
 0x12a   : > { %v1453_v25 = vpop.eup %1452  ;;  %v1920_v6 = vmul.f32 %v1451_v14, %v1808_v45  ;;  %1472 = vpow2.f32 %v692_v5  ;;  %v698_v26 = vmul.f32 1.442695, %v639_v3  ;;  %v1923_v36 = vadd.f32 %v1284_v22, %v1747_v39  ;;  %v593_v27 = vpop.f32.mrb[29].mxu0 }
 0x12b   : > { %v1455_v49 = vpop.eup %1454  ;;  %1474 = vrcp.f32 %v727_v20  ;;  %v726_v30 = vadd.f32 1.0, %v1453_v25  ;;  %v696_v32 = vmul.f32 1.442695, %v638_v29  ;;  %v1926_v52 = vadd.f32 %v1747_v39, %v593_v27 }
 0x12c   : > { %v1457_v35 = vpop.eup %1456  ;;  %v1335_v43 = vpack.c.bf16 %v1913_v42, %v1920_v6  ;;  %v729_v47 = vadd.f32 1.0, %v1455_v49  ;;  %1476 = vpow2.f32 %v698_v26  ;;  %v641_v45 = vsub.f32 0.0, %v1923_v36 }
 0x12d   : > { %v1459_v48 = vpop.eup %1458  ;;  %1478 = vrcp.f32 %v726_v30  ;;  %v728_v59 = vadd.f32 1.0, %v1457_v35  ;;  %v640_v17 = vsub.f32 0.0, %v1926_v52  ;;  %v1287_v51 = vpop.f32.mrb[30].mxu0 }
 0x12e   : > { %v1461_v55 = vpop.eup %1460  ;;  %v1933_v62 = vmul.f32 %v1459_v48, %v1813_v54  ;;  %1480 = vrcp.f32 %v729_v47  ;;  %v702_v57 = vmul.f32 1.442695, %v641_v45  ;;  %v1936_v24 = vadd.f32 %v1287_v51, %v1747_v39  ;;  %v603_v1 = vpop.f32.mrb[31].mxu0 }
 0x12f   : > { %v1463_v5 = vpop.eup %1462  ;;  %v1939_v9 = vmul.f32 %v1461_v55, %v1816_v60  ;;  %1482 = vrcp.f32 %v728_v59  ;;  %v1942_v3 = vadd.f32 %v1747_v39, %v603_v1  ;;  %v700_v29 = vmul.f32 1.442695, %v640_v17 }
 0x130   : > { %v1465_v14 = vpop.eup %1464  ;;  %v731_v20 = vadd.f32 1.0, %v1463_v5  ;;  %1484 = vpow2.f32 %v696_v32  ;;  %v643_v54 = vsub.f32 0.0, %v1936_v24 }
 0x131   : > { %v1467_v22 = vpop.eup %1466  ;;  %v1341_v25 = vpack.c.bf16 %v1933_v62, %v1939_v9  ;;  %v730_v26 = vadd.f32 1.0, %v1465_v14  ;;  %1486 = vpow2.f32 %v702_v57  ;;  %v642_v27 = vsub.f32 0.0, %v1942_v3 }
 0x132   : > { %v1469_v60 = vpop.eup %1468  ;;  %v789_v49 = vmul.f32 %v1467_v22, %v1827_v10  ;;  %1488 = vrcp.f32 %v731_v20  ;;  %v706_v39 = vmul.f32 1.442695, %v643_v54 }
 0x133   : > { %v1471_v30 = vpop.eup %1470  ;;  %v788_v35 = vmul.f32 %v1469_v60, %v1830_v15  ;;  %1490 = vrcp.f32 %v730_v26  ;;  %v704_v45 = vmul.f32 1.442695, %v642_v27 }
 0x134   : > { %v1473_v32 = vpop.eup %1472  ;;  %v733_v47 = vadd.f32 1.0, %v1471_v30  ;;  %1492 = vpow2.f32 %v700_v29 }
 0x135   : > { %v1475_v59 = vpop.eup %1474  ;;  %v732_v17 = vadd.f32 1.0, %v1473_v32  ;;  %1494 = vpow2.f32 %v706_v39  ;;  %v1296_v10 = vpack.c.bf16 %v789_v49, %v788_v35 }
 0x136   : > { %v1477_v51 = vpop.eup %1476  ;;  %v791_v55 = vmul.f32 %v1475_v59, %v1843_v28  ;;  %1496 = vrcp.f32 %v733_v47 }
 0x137   : > { %v1479_v15 = vpop.eup %1478  ;;  %1498 = vrcp.f32 %v732_v17  ;;  %v735_v57 = vadd.f32 1.0, %v1477_v51  ;;  %1298 = vmatprep.subr.msk.bf16.mxu1 %vm1952_vm2, %v1296_v10 }
 0x138   : > { %v1481_v1 = vpop.eup %1480  ;;  %v790_v5 = vmul.f32 %v1479_v15, %v1852_v37  ;;  %1500 = vpow2.f32 %v704_v45  ;;  %1301 = vmatpush3.bf16.xpose.msk.msra.mxu1 %vm1952_vm2, %v1299_v44 }
 0x139   : > { %v1483_v14 = vpop.eup %1482  ;;  %v793_v28 = vmul.f32 %v1481_v1, %v1861_v56  ;;  %1502 = vrcp.f32 %v735_v57 }
 0x13a   : > { %v1485_v20 = vpop.eup %1484  ;;  %v1302_v29 = vpack.c.bf16 %v791_v55, %v790_v5  ;;  %v792_v54 = vmul.f32 %v1483_v14, %v1864_v58 }
 0x13b   : > { %v1487_v22 = vpop.eup %1486  ;;  %v734_v26 = vadd.f32 1.0, %v1485_v20 }
 0x13c   : > { %v1489_v27 = vpop.eup %1488  ;;  %v1308_v60 = vpack.c.bf16 %v793_v28, %v792_v54  ;;  %v737_v37 = vadd.f32 1.0, %v1487_v22  ;;  %1304 = vmatprep.subr.msk.bf16.mxu1 %vm1952_vm2, %v1302_v29 }
 0x13d   : > { %v1491_v63 = vpop.eup %1490  ;;  %v795_v2 = vmul.f32 %v1489_v27, %v1872_v8  ;;  %1504 = vrcp.f32 %v734_v26 }
 0x13e   : > { %v1493_v44 = vpop.eup %1492  ;;  %v794_v56 = vmul.f32 %v1491_v63, %v1878_v13  ;;  %1506 = vrcp.f32 %v737_v37 }
 0x13f   : > { %v1495_v49 = vpop.eup %1494  ;;  %v736_v39 = vadd.f32 1.0, %v1493_v44 }
 0x140   : > { %v1497_v30 = vpop.eup %1496  ;;  %v1314_v58 = vpack.c.bf16 %v795_v2, %v794_v56  ;;  %v739_v35 = vadd.f32 1.0, %v1495_v49  ;;  %1307 = vmatpush3.bf16.xpose.msk.msra.mxu1 %vm1952_vm2, %v1305_v31 }
 0x141   : > { %v1499_v32 = vpop.eup %1498  ;;  %v797_v47 = vmul.f32 %v1497_v30, %v1888_v12  ;;  %1508 = vrcp.f32 %v736_v39  ;;  %1310 = vmatprep.subr.msk.bf16.mxu1 %vm1952_vm2, %v1308_v60 }
 0x142   : > { %v1501_v8 = vpop.eup %1500  ;;  %v796_v13 = vmul.f32 %v1499_v32, %v1894_v38  ;;  %1510 = vrcp.f32 %v739_v35 }
 0x143   : > { %v1503_v45 = vpop.eup %1502  ;;  %v738_v59 = vadd.f32 1.0, %v1501_v8 }
 0x144   : > { %v1320_v17 = vpack.c.bf16 %v797_v47, %v796_v13  ;;  %v799_v18 = vmul.f32 %v1503_v45, %v1904_v0 }
 0x145   : > { %1512 = vrcp.f32 %v738_v59 }
 0x147   : > { %v1505_v21 = vpop.eup %1504 }
 0x148   : > { %v1507_v10 = vpop.eup %1506  ;;  %v798_v31 = vmul.f32 %v1505_v21, %v1910_v7  ;;  %1313 = vmatpush3.bf16.xpose.msk.msra.mxu1 %vm1952_vm2, %v1311_v53  ;;  %v812_v53 = vshrl.u32 %v811_v41, 7 }
 0x149   : > { %1316 = vmatprep.subr.msk.bf16.mxu1 %vm1952_vm2, %v1314_v58  ;;  %v801_v38 = vmul.f32 %v1507_v10, %v1923_v36 }
 0x14a   : > { %v1326_v12 = vpack.c.bf16 %v799_v18, %v798_v31  ;;  %v813_v61 = vsub.s32 0, %v812_v53 }
 0x14b   : > { %v1509_v51 = vpop.eup %1508 }
 0x14c   : > { %v1511_v55 = vpop.eup %1510  ;;  %v800_v0 = vmul.f32 %v1509_v51, %v1926_v52  ;;  %v814_v33 = vrot.slane %v809_v11, %v813_v61 }
 0x14d   : > { %v803_v57 = vmul.f32 %v1511_v55, %v1936_v24 }
 0x14e   : > { %v1332_v15 = vpack.c.bf16 %v801_v38, %v800_v0 }
 0x14f   : > { %v1513_v7 = vpop.eup %1512 }
 0x150   : > { %v802_v1 = vmul.f32 %v1513_v7, %v1942_v3  ;;  %1319 = vmatpush3.bf16.xpose.msk.msra.mxu1 %vm1952_vm2, %v1317_v23  ;;  %v990_v23 = vunpack.c.l.s4 %v1579_v16 }
 0x151   : > { %1322 = vmatprep.subr.msk.bf16.mxu1 %vm1952_vm2, %v1320_v17 }
 0x152   : > { %v1338_v34 = vpack.c.bf16 %v803_v57, %v802_v1  ;;  %v991_v46 = vunpack.c.0.s8 %v990_v23 }
 0x154   : > { %v994_v6 = vsub.s32 %v991_v46, %v812_v53 }
 0x158   : > { %1325 = vmatpush3.bf16.xpose.msk.msra.mxu1 %vm1952_vm2, %v1323_v50 }
 0x159   : > { %1328 = vmatprep.subr.msk.bf16.mxu1 %vm1952_vm2, %v1326_v12 }
 0x160   : > { %1331 = vmatpush3.bf16.xpose.msk.msra.mxu1 %vm1952_vm2, %v1329_v19 }
 0x161   : > { %1334 = vmatprep.subr.msk.bf16.mxu1 %vm1952_vm2, %v1332_v15 }
 0x168   : > { %1337 = vmatpush3.bf16.xpose.msk.msra.mxu1 %vm1952_vm2, %v1335_v43 }
 0x169   : > { %1340 = vmatprep.subr.msk.bf16.mxu1 %vm1952_vm2, %v1338_v34 }
 0x170   : > { %1343 = vmatpush3.bf16.xpose.msk.msra.mxu1 %vm1952_vm2, %v1341_v25 }
 0x177   : > { %1231 = vmatmul.mubr.msk.f32.vlgmr.msra.gmra.mrb[0].mxu1 %vm815_vm1, %v1752_v40 }
 0x24a   : > { %v981_v50 = vpop.f32.mrb[0].mxu1 }
 0x24b   : > { %v982_v4 = vadd.f32 %v981_v50, %v814_v33  ;;  %v983_v42 = vpop.f32.mrb[1].mxu1 }
 0x24c   : > { %v984_v19 = vadd.f32 %v983_v42, %v814_v33 }
 0x24e   : > { %v988_v36 = vcombine.low %v982_v4, %v984_v19 }
 0x250   : > { %v995_v40 = vrot.slane %v988_v36, %v994_v6 }
 0x252   : > { %v1002_v52 = vrot.slane %v995_v40, %v994_v6 }
 0x254   : > { %1008 = vst.msk [vmem:[%s232_s8] sm:$0x3] %vm1006_vm3, %v1002_v52 }
 0x255   : > { %1527 = shalt.err (!%p1524_p3)
}
 0x256   : > { %s1528_s12 = scalar_lea.hbm %s2033_s13, 32  ;;  %s1532_s24 = scalar_lea.hbm %s2080_s5, 128 }
 0x257   : > { %p1529_p4 = scmp.ne.s32.totalorder %s2033_s13, %s1528_s12  ;;  %p1533_p9 = scmp.lt.u32.totalorder %s2033_s13, %s2080_s5 }
 0x258   : > { %p1534_p10 = scmp.lt.u32.totalorder %s1532_s24, %s1528_s12  ;;  %p1536_p12 = scmp.lt.u32.totalorder %s1528_s12, %s2033_s13 }
 0x259   : > { %p1530_p7 = pnand %p1529_p4, %p1649_p5 }
 0x25a   : > { %p1535_p11 = por %p1534_p10, %p1533_p9 }
 0x25b   : > { %p1531_p8 = pneg %p1530_p7 }
 0x25c   : > { %p1537_p13 = por %p1536_p12, %p1535_p11 }
 0x25e   : > { %p1538_p0 = pnand %p1537_p13, %p1531_p8 }
 0x260   : > { %1541 = shalt.err (!%p1538_p0)
}
 0x261   : > { %1344 = dma.vmem_to_hbm [thread:$0]  (%p1649_p5), %s2035_s9, 32, %s2033_s13, %s1010_s14  }
 0x262 PF: > { %p1350_p1 = scmp.ge.s32.totalorder %s1576_s23, 2  ;;  %s1036_s6 = sand.u32 1, %s1564_s20  }
 0x263   : > { %s1037_s7 = scalar_lea.sflag [#allocation4], %s1036_s6 }
 0x264   : > { %p1347_p2 = pnand %p1350_p1, %p1653_p6 }
 0x266   : > { %1559 = dma.done.wait (!%p1347_p2), %s1037_s7, 32  }
 0x267   : > { %1561 = vsyncadd (!%p1347_p2), %s1037_s7, 4294967264  ;;  %p17_p3 = scmp.ge.s32.totalorder %s1637_s25, 6   ;;  %s2085_s20 = smov %s1568_s21 }
 0x268   : > { %s2086_s21 = smov %s1572_s22  ;;  %s2087_s22 = smov %s1647_s28 }
 0x269   : > { %s2088_s23 = smov %s1637_s25  ;;  %19 = sbr.rel (!%p17_p3) target bundleno = 6 (0x6), region = 75 }
 0x270   :  { %1042 = vsyncpa [#allocation4], 1 }
 0x271   :  { %1044 = vsyncpa [#allocation4 + $0x1], 1 }

</bundles_post_ra>
